<compile_context>
chip_gen: v5e
topology: v5e:2x2
jax: 0.10.0
libtpu: 0.0.40
codegen_flags: <defaults>
</compile_context>

<pallas_src>
import jax
import jax.numpy as jnp
from jax import lax
from jax.experimental import pallas as pl
from jax.experimental.pallas import tpu as pltpu

LN_EPS = 1e-5  # PyTorch nn.LayerNorm default

# Column order of the packed hidden-param slab. The kernel slices below MUST
# stay in sync with this tuple (asserted in the wrapper).
_P_HID_COLS = ("b1", "ln1_g", "ln1_b", "b2", "ln2_g", "ln2_b", "wv")


def _round_up(x, m):
    return ((x + m - 1) // m) * m


def _ln_rows(x, gamma_row, beta_row):
    """LayerNorm over the last axis of a [TB, F] tile (features on lanes).

    Fused single-stats-pass form: var = E[x^2] - E[x]^2 (clamped >= 0), then a
    single (x - mean) * inv * gamma + beta pass. Biased variance, eps=1e-5 --
    torch.nn.LayerNorm semantics.
    """
    mean = jnp.mean(x, axis=-1, keepdims=True)            # [TB, 1]
    mean_sq = jnp.mean(x * x, axis=-1, keepdims=True)     # [TB, 1]
    var = jnp.maximum(mean_sq - mean * mean, 0.0)
    inv = lax.rsqrt(var + LN_EPS)
    return ((x - mean) * inv) * gamma_row + beta_row


def _ln_cols(x, gamma_col, beta_col):
    """LayerNorm over the feature axis (axis 0) of an [F, TB] tile (batch on lanes)."""
    mean = jnp.mean(x, axis=0, keepdims=True)              # [1, TB]
    mean_sq = jnp.mean(x * x, axis=0, keepdims=True)       # [1, TB]
    var = jnp.maximum(mean_sq - mean * mean, 0.0)
    inv = lax.rsqrt(var + LN_EPS)
    return ((x - mean) * inv) * gamma_col + beta_col


def critic_kernel(x_ref, w1t_ref, w2t_ref, p_obs_ref, p_hid_ref, bv_ref, out_ref):
    # x_ref     : [TB, obs_dim]  activation tile, contiguous from HBM (pipelined)
    # w1t_ref   : [H, obs_dim]   resident
    # w2t_ref   : [H, H]         resident
    # p_obs_ref : [2, obs_dim]   rows = [ln0_gamma, ln0_beta]
    # p_hid_ref : [H, 7]         cols = _P_HID_COLS
    # bv_ref    : [1, 1]
    # out_ref   : [1, TB]        lane-dense values
    x = x_ref[...].astype(jnp.float32)   # no-op for f32; upcast for bf16 streaming
    p_obs = p_obs_ref[...]
    p_hid = p_hid_ref[...]

    ln0_g, ln0_b = p_obs[0:1, :], p_obs[1:2, :]                       # [1, obs_dim]
    b1, ln1_g, ln1_b = p_hid[:, 0:1], p_hid[:, 1:2], p_hid[:, 2:3]    # [H, 1]
    b2, ln2_g, ln2_b = p_hid[:, 3:4], p_hid[:, 4:5], p_hid[:, 5:6]    # [H, 1]
    wv = p_hid[:, 6:7]                                                # [H, 1]

    # MLPBase.feature_norm : LayerNorm over obs_dim (lane reduce -> XLU, idle here)
    x = _ln_rows(x, ln0_g, ln0_b)                                     # [TB, obs_dim]

    # fc1 : Linear -> ReLU -> LayerNorm.  Contract obs_dim on both operands
    # (w1t @ x^T) so no wrapper transpose is needed and the batch lands on lanes.
    h = lax.dot_general(w1t_ref[...], x, (((1,), (1,)), ((), ())),
                        preferred_element_type=jnp.float32) + b1      # [H, TB]
    h = jnp.maximum(h, 0.0)
    h = _ln_cols(h, ln1_g, ln1_b)

    # fc_h (layer_N = 1) : Linear -> ReLU -> LayerNorm
    h = jnp.dot(w2t_ref[...], h, preferred_element_type=jnp.float32) + b2
    h = jnp.maximum(h, 0.0)
    h = _ln_cols(h, ln2_g, ln2_b)

    # v_out : Linear(H, 1) as VPU multiply + sublane reduce (no N=1 MXU push)
    v = jnp.sum(h * wv, axis=0, keepdims=True) + bv_ref[...]          # [1, TB]
    out_ref[...] = v.astype(out_ref.dtype)


def _choose_tb(B, block_batch):
    """Batch tile: lane-dense multiple of 128, large enough to amortize grid-step
    overhead, capped so that B >= 256 always yields >= 2 grid steps (v7x has 2
    TensorCores; the 'parallel' batch axis shards across them)."""
    tb = max(128, min(_round_up(block_batch, 128), _round_up(B, 128)))
    if B >= 256:
        tb = min(tb, _round_up(pl.cdiv(B, 2), 128))
    # Never exceed the array itself (small-B demo case: one full-extent block).
    return min(tb, B)


def critic_forward(cent_obs, masks, params, block_batch=2048, stream_bf16=False):
    """cent_obs: [B, obs_dim]; masks: unused (parity with the PyTorch forward).

    stream_bf16: opt-in bf16 activation streaming (halves HBM traffic on v5e);
    all in-kernel math stays f32.
    """
    del masks  # not used by the MLP critic forward
    B, obs_dim = cent_obs.shape
    H = params["w1"].shape[1]

    TB = _choose_tb(B, block_batch)
    grid = (pl.cdiv(B, TB),)

    # Zero-copy activation stream: no pad, no transpose.
    x = cent_obs.astype(jnp.bfloat16 if stream_bf16 else jnp.float32)

    # Weights as LHS (tiny, one-time transposes) + packed per-feature slabs
    # (2 DMAs instead of 9 tiny ones).
    w1t = params["w1"].T.astype(jnp.float32)                          # [H, obs_dim]
    w2t = params["w2"].T.astype(jnp.float32)                          # [H, H]
    p_obs = jnp.stack([params["ln0_g"], params["ln0_b"]], axis=0
                      ).astype(jnp.float32)                           # [2, obs_dim]
    p_hid = jnp.stack([params[k] for k in _P_HID_COLS], axis=1
                      ).astype(jnp.float32)                           # [H, 7]
    bv = params["bv"].reshape(1, 1).astype(jnp.float32)               # [1, 1]
    assert p_obs.shape == (2, obs_dim)
    assert p_hid.shape == (H, len(_P_HID_COLS))  # slab order == kernel slices

    def resident(shape):
        # Constant index_map -> block stays VMEM-resident across the batch grid.
        # TODO(synk): at realistic H (>=1024), single-buffer these with
        # pipeline_mode=pl.Buffered(1) and set vmem_limit_bytes explicitly; at
        # H=32 both are no-ops, so they are omitted here.
        return pl.BlockSpec(shape, lambda i: (0, 0))

    out = pl.pallas_call(
        critic_kernel,
        out_shape=jax.ShapeDtypeStruct((1, B), jnp.float32),
        grid=grid,
        in_specs=[
            pl.BlockSpec((TB, obs_dim), lambda i: (i, 0)),  # contiguous, pipelined
            resident((H, obs_dim)),                         # w1^T
            resident((H, H)),                               # w2^T
            resident((2, obs_dim)),                         # feature_norm gamma/beta
            resident((H, len(_P_HID_COLS))),                # b1/ln1/b2/ln2/wv slab
            resident((1, 1)),                               # bv
        ],
        out_specs=pl.BlockSpec((1, TB), lambda i: (0, i)),  # lane-dense output
        compiler_params=pltpu.CompilerParams(
            dimension_semantics=("parallel",)),
    )(x, w1t, w2t, p_obs, p_hid, bv)

    return out.reshape(B, 1)


def init_params(key, obs_dim, hidden_size):
    """Deterministic synthetic init matching the PyTorch module: orthogonal
    Linear weights / zero biases (use_orthogonal=True), LayerNorm gamma=1,
    beta=0.  Linear weights stored as [in_features, out_features]."""
    k1, k2, k3 = jax.random.split(key, 3)
    orth = jax.nn.initializers.orthogonal()
    return {
        "ln0_g": jnp.ones((obs_dim,), jnp.float32),
        "ln0_b": jnp.zeros((obs_dim,), jnp.float32),
        "w1": orth(k1, (obs_dim, hidden_size), jnp.float32),
        "b1": jnp.zeros((hidden_size,), jnp.float32),
        "ln1_g": jnp.ones((hidden_size,), jnp.float32),
        "ln1_b": jnp.zeros((hidden_size,), jnp.float32),
        "w2": orth(k2, (hidden_size, hidden_size), jnp.float32),
        "b2": jnp.zeros((hidden_size,), jnp.float32),
        "ln2_g": jnp.ones((hidden_size,), jnp.float32),
        "ln2_b": jnp.zeros((hidden_size,), jnp.float32),
        "wv": orth(k3, (hidden_size, 1), jnp.float32)[:, 0],
        "bv": jnp.zeros((), jnp.float32),
    }


def _layernorm_ref(x, gamma, beta):
    mean = jnp.mean(x, axis=-1, keepdims=True)
    xc = x - mean
    var = jnp.mean(xc * xc, axis=-1, keepdims=True)
    return xc * lax.rsqrt(var + LN_EPS) * gamma + beta


def critic_ref(cent_obs, params):
    """Pure-JAX reference of the same forward (standard [batch, feature] layout)."""
    x = _layernorm_ref(cent_obs, params["ln0_g"], params["ln0_b"])
    h = jnp.maximum(x @ params["w1"] + params["b1"], 0.0)
    h = _layernorm_ref(h, params["ln1_g"], params["ln1_b"])
    h = jnp.maximum(h @ params["w2"] + params["b2"], 0.0)
    h = _layernorm_ref(h, params["ln2_g"], params["ln2_b"])
    return h @ params["wv"][:, None] + params["bv"]


if __name__ == "__main__":
    OBS_DIM, HIDDEN = 48, 32   # small shapes: cent_obs dim=48, MP.hidden_size=32

    key = jax.random.PRNGKey(0)
    k_obs, k_obs2, k_params = jax.random.split(key, 3)
    params = init_params(k_params, OBS_DIM, HIDDEN)

    # 1) Small-batch check (single full-extent block, zero-copy wrapper).
    B = 8
    cent_obs = jax.random.normal(k_obs, (B, OBS_DIM), dtype=jnp.float32)
    masks = jnp.ones((B, 1), dtype=jnp.float32)  # accepted but unused, as in PyTorch
    values = jax.block_until_ready(critic_forward(cent_obs, masks, params))
    ref = critic_ref(cent_obs, params)
    assert values.shape == (B, 1)
    assert jnp.allclose(values, ref, atol=1e-4, rtol=1e-5), \
        float(jnp.max(jnp.abs(values - ref)))

    # 2) Ragged multi-step check: 2 grid steps (v7x megacore path), last block
    #    masked on store, no wrapper-side pad or transpose.
    B2 = 260
    cent_obs2 = jax.random.normal(k_obs2, (B2, OBS_DIM), dtype=jnp.float32)
    masks2 = jnp.ones((B2, 1), dtype=jnp.float32)
    values2 = jax.block_until_ready(critic_forward(cent_obs2, masks2, params))
    ref2 = critic_ref(cent_obs2, params)
    assert values2.shape == (B2, 1)
    assert jnp.allclose(values2, ref2, atol=1e-4, rtol=1e-5), \
        float(jnp.max(jnp.abs(values2 - ref2)))

    # 3) Opt-in bf16 activation streaming (v5e bandwidth mode): compare against a
    #    reference fed the same bf16-quantized input so only kernel math differs.
    values3 = jax.block_until_ready(
        critic_forward(cent_obs, masks, params, stream_bf16=True))
    ref3 = critic_ref(cent_obs.astype(jnp.bfloat16).astype(jnp.float32), params)
    assert jnp.allclose(values3, ref3, atol=1e-4, rtol=1e-5), \
        float(jnp.max(jnp.abs(values3 - ref3)))

    print("KERNEL_OK")
</pallas_src>

<mosaic_0001>
module attributes {stable_mosaic.version = 11 : i64} {
  func.func @critic_kernel(%arg0: i32, %arg1: memref<8x48xf32, #tpu.memory_space<vmem>>, %arg2: memref<32x48xf32, #tpu.memory_space<vmem>>, %arg3: memref<32x32xf32, #tpu.memory_space<vmem>>, %arg4: memref<2x48xf32, #tpu.memory_space<vmem>>, %arg5: memref<32x7xf32, #tpu.memory_space<vmem>>, %arg6: memref<1x1xf32, #tpu.memory_space<vmem>>, %arg7: memref<1x8xf32, #tpu.memory_space<vmem>>) attributes {dimension_semantics = [#tpu.dimension_semantics<parallel>], iteration_bounds = array<i64: 1>, scalar_prefetch = 0 : i64, scratch_operands = 0 : i64, tpu.core_type = #tpu.core_type<tc>, window_params = [{transform_indices = @transform_0, window_bounds = array<i64: 8, 48>}, {pipeline_mode = #tpu.pipeline_mode<synchronous>, transform_indices = @transform_1, window_bounds = array<i64: 32, 48>}, {pipeline_mode = #tpu.pipeline_mode<synchronous>, transform_indices = @transform_2, window_bounds = array<i64: 32, 32>}, {pipeline_mode = #tpu.pipeline_mode<synchronous>, transform_indices = @transform_3, window_bounds = array<i64: 2, 48>}, {pipeline_mode = #tpu.pipeline_mode<synchronous>, transform_indices = @transform_4, window_bounds = array<i64: 32, 7>}, {pipeline_mode = #tpu.pipeline_mode<synchronous>, transform_indices = @transform_5, window_bounds = array<i64: 1, 1>}, {transform_indices = @transform_6, window_bounds = array<i64: 1, 8>}]} {
    %c0 = arith.constant 0 : index
    %c0_0 = arith.constant 0 : index
    %0 = vector.load %arg1[%c0, %c0_0] : memref<8x48xf32, #tpu.memory_space<vmem>>, vector<8x48xf32>
    %c0_1 = arith.constant 0 : index
    %c0_2 = arith.constant 0 : index
    %1 = vector.load %arg4[%c0_1, %c0_2] : memref<2x48xf32, #tpu.memory_space<vmem>>, vector<2x48xf32>
    %c0_3 = arith.constant 0 : index
    %c0_4 = arith.constant 0 : index
    %2 = vector.load %arg5[%c0_3, %c0_4] : memref<32x7xf32, #tpu.memory_space<vmem>>, vector<32x7xf32>
    %3 = vector.extract_strided_slice %1 {offsets = [0, 0], sizes = [1, 48], strides = [1, 1]} : vector<2x48xf32> to vector<1x48xf32>
    %4 = vector.extract_strided_slice %1 {offsets = [1, 0], sizes = [1, 48], strides = [1, 1]} : vector<2x48xf32> to vector<1x48xf32>
    %5 = vector.extract_strided_slice %2 {offsets = [0, 0], sizes = [32, 1], strides = [1, 1]} : vector<32x7xf32> to vector<32x1xf32>
    %6 = vector.extract_strided_slice %2 {offsets = [0, 1], sizes = [32, 1], strides = [1, 1]} : vector<32x7xf32> to vector<32x1xf32>
    %7 = vector.extract_strided_slice %2 {offsets = [0, 2], sizes = [32, 1], strides = [1, 1]} : vector<32x7xf32> to vector<32x1xf32>
    %8 = vector.extract_strided_slice %2 {offsets = [0, 3], sizes = [32, 1], strides = [1, 1]} : vector<32x7xf32> to vector<32x1xf32>
    %9 = vector.extract_strided_slice %2 {offsets = [0, 4], sizes = [32, 1], strides = [1, 1]} : vector<32x7xf32> to vector<32x1xf32>
    %10 = vector.extract_strided_slice %2 {offsets = [0, 5], sizes = [32, 1], strides = [1, 1]} : vector<32x7xf32> to vector<32x1xf32>
    %11 = vector.extract_strided_slice %2 {offsets = [0, 6], sizes = [32, 1], strides = [1, 1]} : vector<32x7xf32> to vector<32x1xf32>
    %cst = arith.constant dense<0.000000e+00> : vector<8xf32>
    %12 = vector.multi_reduction <add>, %0, %cst [1] : vector<8x48xf32> to vector<8xf32>
    %13 = vector.shape_cast %12 : vector<8xf32> to vector<8x1xf32>
    %cst_5 = arith.constant 4.800000e+01 : f32
    %14 = vector.broadcast %cst_5 : f32 to vector<8x1xf32>
    %15 = arith.divf %13, %14 : vector<8x1xf32>
    %16 = arith.mulf %0, %0 : vector<8x48xf32>
    %cst_6 = arith.constant dense<0.000000e+00> : vector<8xf32>
    %17 = vector.multi_reduction <add>, %16, %cst_6 [1] : vector<8x48xf32> to vector<8xf32>
    %18 = vector.shape_cast %17 : vector<8xf32> to vector<8x1xf32>
    %cst_7 = arith.constant 4.800000e+01 : f32
    %19 = vector.broadcast %cst_7 : f32 to vector<8x1xf32>
    %20 = arith.divf %18, %19 : vector<8x1xf32>
    %21 = arith.mulf %15, %15 : vector<8x1xf32>
    %22 = arith.subf %20, %21 : vector<8x1xf32>
    %cst_8 = arith.constant 0.000000e+00 : f32
    %23 = vector.broadcast %cst_8 : f32 to vector<8x1xf32>
    %24 = arith.maximumf %22, %23 : vector<8x1xf32>
    %cst_9 = arith.constant 9.99999974E-6 : f32
    %25 = vector.broadcast %cst_9 : f32 to vector<8x1xf32>
    %26 = arith.addf %24, %25 : vector<8x1xf32>
    %27 = math.rsqrt %26 : vector<8x1xf32>
    %28 = vector.broadcast %15 : vector<8x1xf32> to vector<8x48xf32>
    %29 = arith.subf %0, %28 : vector<8x48xf32>
    %30 = vector.broadcast %27 : vector<8x1xf32> to vector<8x48xf32>
    %31 = arith.mulf %29, %30 : vector<8x48xf32>
    %32 = vector.broadcast %3 : vector<1x48xf32> to vector<8x48xf32>
    %33 = arith.mulf %31, %32 : vector<8x48xf32>
    %34 = vector.broadcast %4 : vector<1x48xf32> to vector<8x48xf32>
    %35 = arith.addf %33, %34 : vector<8x48xf32>
    %c0_10 = arith.constant 0 : index
    %c0_11 = arith.constant 0 : index
    %36 = vector.load %arg2[%c0_10, %c0_11] : memref<32x48xf32, #tpu.memory_space<vmem>>, vector<32x48xf32>
    %cst_12 = arith.constant dense<0.000000e+00> : vector<32x8xf32>
    %37 = tpu.matmul %36, %35, %cst_12 {dimension_numbers = #tpu.dot_dimension_numbers<[1], [1], [0], [0], [0, 0, 1, 0], [], []>} : vector<32x48xf32>, vector<8x48xf32>, vector<32x8xf32> -> vector<32x8xf32>
    %38 = vector.broadcast %5 : vector<32x1xf32> to vector<32x8xf32>
    %39 = arith.addf %37, %38 : vector<32x8xf32>
    %cst_13 = arith.constant 0.000000e+00 : f32
    %40 = vector.broadcast %cst_13 : f32 to vector<32x8xf32>
    %41 = arith.maximumf %39, %40 : vector<32x8xf32>
    %cst_14 = arith.constant dense<0.000000e+00> : vector<8xf32>
    %42 = vector.multi_reduction <add>, %41, %cst_14 [0] : vector<32x8xf32> to vector<8xf32>
    %43 = vector.shape_cast %42 : vector<8xf32> to vector<1x8xf32>
    %cst_15 = arith.constant 3.200000e+01 : f32
    %44 = vector.broadcast %cst_15 : f32 to vector<1x8xf32>
    %45 = arith.divf %43, %44 : vector<1x8xf32>
    %46 = arith.mulf %41, %41 : vector<32x8xf32>
    %cst_16 = arith.constant dense<0.000000e+00> : vector<8xf32>
    %47 = vector.multi_reduction <add>, %46, %cst_16 [0] : vector<32x8xf32> to vector<8xf32>
    %48 = vector.shape_cast %47 : vector<8xf32> to vector<1x8xf32>
    %cst_17 = arith.constant 3.200000e+01 : f32
    %49 = vector.broadcast %cst_17 : f32 to vector<1x8xf32>
    %50 = arith.divf %48, %49 : vector<1x8xf32>
    %51 = arith.mulf %45, %45 : vector<1x8xf32>
    %52 = arith.subf %50, %51 : vector<1x8xf32>
    %cst_18 = arith.constant 0.000000e+00 : f32
    %53 = vector.broadcast %cst_18 : f32 to vector<1x8xf32>
    %54 = arith.maximumf %52, %53 : vector<1x8xf32>
    %cst_19 = arith.constant 9.99999974E-6 : f32
    %55 = vector.broadcast %cst_19 : f32 to vector<1x8xf32>
    %56 = arith.addf %54, %55 : vector<1x8xf32>
    %57 = math.rsqrt %56 : vector<1x8xf32>
    %58 = vector.broadcast %45 : vector<1x8xf32> to vector<32x8xf32>
    %59 = arith.subf %41, %58 : vector<32x8xf32>
    %60 = vector.broadcast %57 : vector<1x8xf32> to vector<32x8xf32>
    %61 = arith.mulf %59, %60 : vector<32x8xf32>
    %62 = vector.broadcast %6 : vector<32x1xf32> to vector<32x8xf32>
    %63 = arith.mulf %61, %62 : vector<32x8xf32>
    %64 = vector.broadcast %7 : vector<32x1xf32> to vector<32x8xf32>
    %65 = arith.addf %63, %64 : vector<32x8xf32>
    %c0_20 = arith.constant 0 : index
    %c0_21 = arith.constant 0 : index
    %66 = vector.load %arg3[%c0_20, %c0_21] : memref<32x32xf32, #tpu.memory_space<vmem>>, vector<32x32xf32>
    %cst_22 = arith.constant dense<0.000000e+00> : vector<32x8xf32>
    %67 = tpu.matmul %66, %65, %cst_22 {dimension_numbers = #tpu.dot_dimension_numbers<[1], [0], [0], [1], [0, 0, 1, 1], [], []>} : vector<32x32xf32>, vector<32x8xf32>, vector<32x8xf32> -> vector<32x8xf32>
    %68 = vector.broadcast %8 : vector<32x1xf32> to vector<32x8xf32>
    %69 = arith.addf %67, %68 : vector<32x8xf32>
    %cst_23 = arith.constant 0.000000e+00 : f32
    %70 = vector.broadcast %cst_23 : f32 to vector<32x8xf32>
    %71 = arith.maximumf %69, %70 : vector<32x8xf32>
    %cst_24 = arith.constant dense<0.000000e+00> : vector<8xf32>
    %72 = vector.multi_reduction <add>, %71, %cst_24 [0] : vector<32x8xf32> to vector<8xf32>
    %73 = vector.shape_cast %72 : vector<8xf32> to vector<1x8xf32>
    %cst_25 = arith.constant 3.200000e+01 : f32
    %74 = vector.broadcast %cst_25 : f32 to vector<1x8xf32>
    %75 = arith.divf %73, %74 : vector<1x8xf32>
    %76 = arith.mulf %71, %71 : vector<32x8xf32>
    %cst_26 = arith.constant dense<0.000000e+00> : vector<8xf32>
    %77 = vector.multi_reduction <add>, %76, %cst_26 [0] : vector<32x8xf32> to vector<8xf32>
    %78 = vector.shape_cast %77 : vector<8xf32> to vector<1x8xf32>
    %cst_27 = arith.constant 3.200000e+01 : f32
    %79 = vector.broadcast %cst_27 : f32 to vector<1x8xf32>
    %80 = arith.divf %78, %79 : vector<1x8xf32>
    %81 = arith.mulf %75, %75 : vector<1x8xf32>
    %82 = arith.subf %80, %81 : vector<1x8xf32>
    %cst_28 = arith.constant 0.000000e+00 : f32
    %83 = vector.broadcast %cst_28 : f32 to vector<1x8xf32>
    %84 = arith.maximumf %82, %83 : vector<1x8xf32>
    %cst_29 = arith.constant 9.99999974E-6 : f32
    %85 = vector.broadcast %cst_29 : f32 to vector<1x8xf32>
    %86 = arith.addf %84, %85 : vector<1x8xf32>
    %87 = math.rsqrt %86 : vector<1x8xf32>
    %88 = vector.broadcast %75 : vector<1x8xf32> to vector<32x8xf32>
    %89 = arith.subf %71, %88 : vector<32x8xf32>
    %90 = vector.broadcast %87 : vector<1x8xf32> to vector<32x8xf32>
    %91 = arith.mulf %89, %90 : vector<32x8xf32>
    %92 = vector.broadcast %9 : vector<32x1xf32> to vector<32x8xf32>
    %93 = arith.mulf %91, %92 : vector<32x8xf32>
    %94 = vector.broadcast %10 : vector<32x1xf32> to vector<32x8xf32>
    %95 = arith.addf %93, %94 : vector<32x8xf32>
    %96 = vector.broadcast %11 : vector<32x1xf32> to vector<32x8xf32>
    %97 = arith.mulf %95, %96 : vector<32x8xf32>
    %cst_30 = arith.constant dense<0.000000e+00> : vector<8xf32>
    %98 = vector.multi_reduction <add>, %97, %cst_30 [0] : vector<32x8xf32> to vector<8xf32>
    %99 = vector.shape_cast %98 : vector<8xf32> to vector<1x8xf32>
    %c0_31 = arith.constant 0 : index
    %c0_32 = arith.constant 0 : index
    %100 = vector.load %arg6[%c0_31, %c0_32] : memref<1x1xf32, #tpu.memory_space<vmem>>, vector<1x1xf32>
    %101 = vector.broadcast %100 : vector<1x1xf32> to vector<1x8xf32>
    %102 = arith.addf %99, %101 : vector<1x8xf32>
    %c0_33 = arith.constant 0 : index
    %c0_34 = arith.constant 0 : index
    %103 = vector.load %arg7[%c0_33, %c0_34] : memref<1x8xf32, #tpu.memory_space<vmem>>, vector<1x8xf32>
    tpu.vector_store %arg7[%c0_33, %c0_34], %102 {strides = array<i32>} : memref<1x8xf32, #tpu.memory_space<vmem>>, vector<1x8xf32>,
    return
  }
  func.func @transform_0(%arg0: i32) -> (i32, i32) {
    %c0_i32 = arith.constant 0 : i32
    %c0_i32_0 = arith.constant 0 : i32
    return %arg0, %c0_i32 : i32, i32
  }
  func.func @transform_1(%arg0: i32) -> (i32, i32) {
    %c0_i32 = arith.constant 0 : i32
    %c0_i32_0 = arith.constant 0 : i32
    %c0_i32_1 = arith.constant 0 : i32
    return %c0_i32, %c0_i32_0 : i32, i32
  }
  func.func @transform_2(%arg0: i32) -> (i32, i32) {
    %c0_i32 = arith.constant 0 : i32
    %c0_i32_0 = arith.constant 0 : i32
    %c0_i32_1 = arith.constant 0 : i32
    return %c0_i32, %c0_i32_0 : i32, i32
  }
  func.func @transform_3(%arg0: i32) -> (i32, i32) {
    %c0_i32 = arith.constant 0 : i32
    %c0_i32_0 = arith.constant 0 : i32
    %c0_i32_1 = arith.constant 0 : i32
    return %c0_i32, %c0_i32_0 : i32, i32
  }
  func.func @transform_4(%arg0: i32) -> (i32, i32) {
    %c0_i32 = arith.constant 0 : i32
    %c0_i32_0 = arith.constant 0 : i32
    %c0_i32_1 = arith.constant 0 : i32
    return %c0_i32, %c0_i32_0 : i32, i32
  }
  func.func @transform_5(%arg0: i32) -> (i32, i32) {
    %c0_i32 = arith.constant 0 : i32
    %c0_i32_0 = arith.constant 0 : i32
    %c0_i32_1 = arith.constant 0 : i32
    return %c0_i32, %c0_i32_0 : i32, i32
  }
  func.func @transform_6(%arg0: i32) -> (i32, i32) {
    %c0_i32 = arith.constant 0 : i32
    %c0_i32_0 = arith.constant 0 : i32
    return %c0_i32, %arg0 : i32, i32
  }
}

</mosaic_0001>

<bundles_post_ra>
// kernel: tpu_custom_call.1
= control target key start
LH: loop header
LB: loop body
LE: loop exit
PB: predicated region body
PF: predicated region fallthrough
CT: control target
= control target key end

     0   :  { %s790_s0 = inlined_call_operand.vmem [shape: f32[8,48], index: 0, kind: input, shape index: {}]   ;;  %s791_s1 = inlined_call_operand.vmem [shape: f32[32,48], index: 1, kind: input, shape index: {}]   ;;  %s792_s2 = inlined_call_operand.hbm [shape: f32[32,32], index: 2, kind: input, shape index: {}]   ;;  %s793_s3 = inlined_call_operand.vmem [shape: f32[2,48], index: 3, kind: input, shape index: {}]   ;;  %s794_s4 = inlined_call_operand.vmem [shape: f32[32,7], index: 4, kind: input, shape index: {}]   ;;  %s795_s5 = inlined_call_operand.<no memory space> [shape: f32[1,1], index: 5, kind: input, shape index: {}]   ;;  %s796_s6 = inlined_call_operand.hbm [shape: f32[1,8], index: 6, kind: output, shape index: {}]  }
   0x1   :  { %v11_v0 = vstv %s795_s5 }
   0x2   :  { %12 = vst [vmem:[#allocation2] sm:$0x1] %v11_v0 }
   0x3   :  { %13 = vsyncpa [#allocation4], 0 }
   0x4   :  { %14 = vsyncpa [#allocation5], 0  ;;  %s23_s25 = sshll.u32 %s792_s2, 4  ;;  %s584_s26 = smov [#allocation3]   ;;  %s24_s25 = int_to_ptr.hbm [resolvable:$true] %s23_s25 }
   0x5   :  { %s25_s27 = sshll.u32 %s584_s26, 4  ;;  %s585_s28 = smov 128   ;;  %s26_s27 = int_to_ptr.vmem [resolvable:$true] %s25_s27 }
   0x6   :  { %s586_s29 = smov 8  }
   0x7   :  { %31 = dma.hbm_to_vmem [thread:$0]  %s24_s25, 512, %s26_s27, [#allocation4], %s585_s28, %s585_s28, %s586_s29  }
   0x8   :  { %580 = dma.done.wait [#allocation4], 512  }
   0x9   :  { %581 = vsyncadd [#allocation4], 4294966784  ;;  %vm48_vm0 = vcmask 392192   ;;  %v42_v1 = vld [vmem:[%s790_s0] sm:$0xff]  ;;  %v587_v5 = vmov 48.0   ;;  %v588_v19 = vmov 0  }
   0xa   :  { %v49_v2 = vsel %vm48_vm0, %v42_v1, 0.0  ;;  %v60_v3 = vmul.f32 %v42_v1, %v42_v1  ;;  %522 = vrcp.f32 %v587_v5  ;;  %506 = vset.pattern.permute.xlu1 %v588_v19  ;;  %507 = vset.pattern.permute.xlu2 %v588_v19  ;;  %v648_v21 = vld [vmem:[%s794_s4] sm:$0xff]  ;;  %v654_v26 = vld [vmem:[%s794_s4 + $0x8] sm:$0xff]  ;;  %v659_v27 = vld [vmem:[%s794_s4 + $0x10] sm:$0xff]  ;;  %v589_v31 = vmov 1   ;;  %s469_s24 = sshll.u32 %s796_s6, 4  ;;  %s470_s24 = int_to_ptr.hbm [resolvable:$true] %s469_s24 }
   0xb   :  { %50 = vadd.xlane.f32.xlu0 %v49_v2  ;;  %91 = vperm.xlu1 %506, %v648_v21   ;;  %v43_v29 = vld [vmem:[%s793_s3] sm:$0x3]  ;;  %v669_v30 = vld [vmem:[%s794_s4 + $0x18] sm:$0xff]  ;;  %v86_v40 = vld [vmem:[%s791_s1 + $0x8] sm:$0xff]  ;;  %v590_v42 = vmov 2   ;;  %v591_v52 = vmov 32.0  }
   0xc   :  { %v61_v4 = vsel %vm48_vm0, %v60_v3, 0.0  ;;  %101 = vperm.xlu2 %507, %v659_v27   ;;  %508 = vset.pattern.permute.xlu0 %v589_v31  ;;  %v81_v34 = vperm.slane %v43_v29, 0  ;;  %v83_v37 = vperm.slane %v43_v29, 1  ;;  %v85_v41 = vld [vmem:[%s791_s1] sm:$0xff]  ;;  %v87_v43 = vld [vmem:[%s791_s1 + $0x10] sm:$0xff]  ;;  %v88_v44 = vld [vmem:[%s791_s1 + $0x18] sm:$0xff] }
   0xd   :  { %vm157_vm5 = vcmask 64512   ;;  %vm279_vm10 = vcmask 261120   ;;  %s596_s1 = smov [#allocation6]   ;;  %vm460_vm14 = vcmask 57344  }
   0xe   :  { %s467_s21 = sshll.u32 %s596_s1, 4  ;;  %s468_s21 = int_to_ptr.vmem [resolvable:$true] %s467_s21 }
  0x10   :  { %v523_v6 = vpop.eup %522 }
  0x11   :  { %v53_v7 = vmul.f32 48.0, %v523_v6  ;;  %vm57_vm1 = vweird.f32 %v523_v6 }
  0x13   :  { %62 = vadd.xlane.f32.xlu0 %v61_v4  ;;  %v54_v8 = vsub.f32 1.0, %v53_v7  ;;  %96 = vperm.xlu1 %506, %v654_v26  }
  0x14   :  { %106 = vperm.xlu2 %507, %v669_v30  }
  0x15   :  { %v55_v9 = vmul.f32 %v523_v6, %v54_v8 }
  0x17   :  { %v56_v10 = vadd.f32 %v523_v6, %v55_v9 }
  0x19   :  { %v58_v12 = vsel %vm57_vm1, %v523_v6, %v56_v10 }
  0x1b   :  { %509 = vset.pattern.permute.xlu1 %v589_v31 }
  0x1c   :  { %228 = vperm.xlu1 %509, %v659_v27   ;;  %510 = vset.pattern.permute.xlu2 %v590_v42 }
  0x1d   :  { %252 = vperm.xlu2 %510, %v669_v30  }
  0x24   :  { %224 = vperm.xlu1 %509, %v654_v26  }
  0x25   :  { %248 = vperm.xlu2 %510, %v659_v27  }
  0x27   :  { %232 = vperm.xlu0 %508, %v669_v30  }
  0x2c   :  { %220 = vperm.xlu1 %509, %v648_v21  }
  0x2d   :  { %244 = vperm.xlu2 %510, %v654_v26  }
  0x34   :  { %511 = vset.pattern.permute.xlu1 %v590_v42 }
  0x35   :  { %240 = vperm.xlu1 %511, %v648_v21  }
  0x66   :  { %v102_v51 = vpop.permute.xlu2 %101 }
  0x6e   :  { %v107_v0 = vpop.permute.xlu2 %106 }
  0x7d   :  { %v92_v45 = vpop.permute.xlu1 %91 }
  0x7e   :  { %v51_v11 = vpop.xlane.xlu0 %50 }
  0x7f   :  { %v59_v13 = vmul.f32 %v58_v12, %v51_v11 }
  0x81   :  { %v65_v15 = vmul.f32 %v59_v13, %v59_v13  ;;  %v79_v33 = vsub.f32 %v42_v1, %v59_v13 }
  0x85   :  { %v97_v47 = vpop.permute.xlu1 %96 }
  0x86   :  { %v63_v14 = vpop.xlane.xlu0 %62 }
  0x87   :  { %v64_v16 = vmul.f32 %v63_v14, %v58_v12 }
  0x89   :  { %v66_v17 = vsub.f32 %v64_v16, %v65_v15 }
  0x8b   :  { %v67_v18 = vmax.f32 %v66_v17, 0.0 }
  0x8d   :  { %v68_v20 = vadd.f32 1e-05, %v67_v18 }
  0x8f   :  { %524 = vrsqrt.f32 %v68_v20  ;;  %vm75_vm3 = vweird.f32 %v68_v20 }
  0x90   :  { %526 = vrcp.f32 %v591_v52 }
  0x95   :  { %v525_v22 = vpop.eup %524 }
  0x96   :  { %v70_v23 = vmul.f32 %v525_v22, %v68_v20  ;;  %vm76_vm2 = vweird.f32 %v525_v22  ;;  %v527_v58 = vpop.eup %526 }
  0x97   :  { %vm77_vm4 = vmor %vm75_vm3, %vm76_vm2  ;;  %v172_v2 = vmul.f32 32.0, %v527_v58  ;;  %vm176_vm6 = vweird.f32 %v527_v58 }
  0x98   :  { %v71_v24 = vmul.f32 %v525_v22, %v70_v23 }
  0x99   :  { %v173_v13 = vsub.f32 1.0, %v172_v2  ;;  %v594_v2 = vmov 5  }
  0x9a   :  { %v72_v25 = vmul.f32 0.5, %v71_v24 }
  0x9c   :  { %v73_v28 = vsub.f32 1.5, %v72_v25 }
  0x9e   :  { %v74_v32 = vmul.f32 %v525_v22, %v73_v28 }
  0xa0   :  { %v78_v35 = vsel %vm77_vm4, %v525_v22, %v74_v32  ;;  %v174_v22 = vmul.f32 %v527_v58, %v173_v13 }
  0xa1   :  { %v80_v36 = vmul.f32 %v79_v33, %v78_v35 }
  0xa2   :  { %v175_v29 = vadd.f32 %v527_v58, %v174_v22  ;;  %v595_v22 = vmov 6  }
  0xa3   :  { %v82_v38 = vmul.f32 %v81_v34, %v80_v36 }
  0xa4   :  { %v726_v35 = vsel %vm176_vm6, %v527_v58, %v175_v29 }
  0xa5   :  { %v84_v39 = vadd.f32 %v83_v37, %v82_v38 }
  0xa7   :  { %479 = vmatpush.xpose.msk.msra.mxu0 %vm48_vm0, %v84_v39  ;;  %488 = vmatpush.xpose.msk.msra.mxu3 %vm48_vm0, %v84_v39 }
  0xaa   :  { %481 = vmatmul.msk.f32.vlgmr.msra.gmra.mxu3 %vm48_vm0, %v86_v40  ;;  %480 = vmatmul.msk.f32.vlgmr.msra.gmra.mxu0 %vm48_vm0, %v85_v41 }
  0xb2   :  { %482 = vmatmul.msk.f32.gmra.mxu3 %vm48_vm0, %v87_v43 }
  0xba   :  { %483 = vmatmul.msk.f32.gmra.mxu3 %vm48_vm0, %v88_v44  ;;  %v229_v44 = vpop.permute.xlu1 %228 }
 0x127   :  { %v141_v48 = vpop.f32.mrf.mxu0 }
 0x128   :  { %v142_v49 = vadd.f32 %v141_v48, %v92_v45 }
 0x12a   :  { %v698_v54 = vmax.f32 %v142_v49, 0.0  ;;  %v225_v49 = vpop.permute.xlu1 %224 }
 0x12c   :  { %v179_v59 = vmul.f32 %v698_v54, %v698_v54  ;;  %v158_v61 = vsel %vm157_vm5, %v698_v54, 0.0 }
 0x12d   :  { %v144_v46 = vpop.f32.mrf.mxu3 }
 0x12e   :  { %v145_v50 = vadd.f32 %v144_v46, %v97_v47  ;;  %v183_v3 = vsel %vm157_vm5, %v179_v59, 0.0  ;;  %v253_v46 = vpop.permute.xlu2 %252 }
 0x130   :  { %v700_v55 = vmax.f32 %v145_v50, 0.0  ;;  %v592_v50 = vmov 3  }
 0x131   :  { %513 = vset.pattern.permute.xlu1 %v592_v50  ;;  %514 = vset.pattern.permute.xlu0 %v592_v50 }
 0x132   :  { %v180_v60 = vmul.f32 %v700_v55, %v700_v55  ;;  %v159_v62 = vsel %vm157_vm5, %v700_v55, 0.0  ;;  %268 = vperm.xlu1 %513, %v654_v26   ;;  %276 = vperm.xlu0 %514, %v669_v30  }
 0x133   :  { %v160_v7 = vadd.f32 %v159_v62, %v158_v61  ;;  %512 = vset.pattern.permute.xlu2 %v592_v50 }
 0x134   :  { %v184_v4 = vsel %vm157_vm5, %v180_v60, 0.0  ;;  %264 = vperm.xlu2 %512, %v648_v21  }
 0x135   :  { %v147_v53 = vpop.f32.mrf.mxu3  ;;  %v185_v10 = vadd.f32 %v184_v4, %v183_v3 }
 0x136   :  { %v148_v56 = vadd.f32 %v147_v53, %v102_v51  ;;  %v249_v58 = vpop.permute.xlu2 %248 }
 0x138   :  { %v702_v57 = vmax.f32 %v148_v56, 0.0 }
 0x13a   :  { %v181_v63 = vmul.f32 %v702_v57, %v702_v57  ;;  %v161_v5 = vsel %vm157_vm5, %v702_v57, 0.0  ;;  %518 = vset.pattern.permute.xlu0 %v594_v2 }
 0x13b   :  { %v162_v11 = vadd.f32 %v161_v5, %v160_v7  ;;  %404 = vperm.xlu0 %518, %v654_v26  }
 0x13c   :  { %v186_v8 = vsel %vm157_vm5, %v181_v63, 0.0  ;;  %v221_v63 = vpop.permute.xlu1 %220  ;;  %272 = vperm.xlu2 %512, %v659_v27  }
 0x13d   :  { %v150_v1 = vpop.f32.mrf.mxu3  ;;  %v187_v15 = vadd.f32 %v186_v8, %v185_v10 }
 0x13e   :  { %v151_v6 = vadd.f32 %v150_v1, %v107_v0  ;;  %v233_v0 = vpop.permute.xlu0 %232  ;;  %v593_v1 = vmov 4  }
 0x13f   :  { %515 = vset.pattern.permute.xlu1 %v593_v1 }
 0x140   :  { %v719_v9 = vmax.f32 %v151_v6, 0.0  ;;  %380 = vperm.xlu1 %515, %v648_v21  }
 0x142   :  { %v163_v12 = vsel %vm157_vm5, %v719_v9, 0.0  ;;  %v182_v14 = vmul.f32 %v719_v9, %v719_v9 }
 0x143   :  { %v164_v16 = vadd.f32 %v163_v12, %v162_v11  ;;  %v245_v12 = vpop.permute.xlu2 %244  ;;  %412 = vperm.xlu0 %518, %v669_v30  }
 0x144   :  { %v188_v17 = vsel %vm157_vm5, %v182_v14, 0.0  ;;  %v241_v13 = vpop.permute.xlu1 %240  ;;  %516 = vset.pattern.permute.xlu2 %v593_v1 }
 0x145   :  { %v165_v18 = vrot.slane %v164_v16, 4  ;;  %v189_v20 = vadd.f32 %v188_v17, %v187_v15  ;;  %v259_v15 = vld [vmem:[#allocation3] sm:$0xff]  ;;  %384 = vperm.xlu2 %516, %v654_v26   ;;  %v452_v17 = vld [vmem:[#allocation2] sm:$0x1] }
 0x147   :  { %v166_v23 = vadd.f32 %v165_v18, %v164_v16  ;;  %v190_v24 = vrot.slane %v189_v20, 4  ;;  %v261_v16 = vld [vmem:[#allocation3 + $0x10] sm:$0xff]  ;;  %v260_v18 = vld [vmem:[#allocation3 + $0x8] sm:$0xff] }
 0x148   :  { %388 = vperm.xlu1 %515, %v659_v27  }
 0x149   :  { %v167_v25 = vrot.slane %v166_v23, 2  ;;  %v191_v28 = vadd.f32 %v190_v24, %v189_v20  ;;  %v262_v20 = vld [vmem:[#allocation3 + $0x18] sm:$0xff] }
 0x14b   :  { %v168_v31 = vadd.f32 %v167_v25, %v166_v23  ;;  %v192_v32 = vrot.slane %v191_v28, 2  ;;  %521 = vset.pattern.permute.xlu0 %v588_v19 }
 0x14c   :  { %455 = vperm.xlu0 %521, %v452_v17  }
 0x14d   :  { %v169_v33 = vrot.slane %v168_v31, 1  ;;  %v193_v34 = vadd.f32 %v192_v32, %v191_v28  ;;  %517 = vset.pattern.permute.xlu2 %v594_v2 }
 0x14e   :  { %400 = vperm.xlu2 %517, %v648_v21  }
 0x14f   :  { %v170_v36 = vadd.f32 %v169_v33, %v168_v31  ;;  %v194_v37 = vrot.slane %v193_v34, 1 }
 0x150   :  { %392 = vperm.xlu1 %515, %v669_v30  }
 0x151   :  { %v178_v38 = vmul.f32 %v726_v35, %v170_v36  ;;  %v195_v39 = vadd.f32 %v194_v37, %v193_v34 }
 0x153   :  { %v196_v40 = vmul.f32 %v195_v39, %v726_v35  ;;  %v197_v41 = vmul.f32 %v178_v38, %v178_v38  ;;  %v213_v59 = vsub.f32 %v702_v57, %v178_v38  ;;  %v212_v60 = vsub.f32 %v700_v55, %v178_v38 }
 0x154   :  { %v214_v61 = vsub.f32 %v719_v9, %v178_v38  ;;  %v211_v5 = vsub.f32 %v698_v54, %v178_v38 }
 0x155   :  { %v198_v42 = vsub.f32 %v196_v40, %v197_v41 }
 0x156   :  { %408 = vperm.xlu2 %517, %v659_v27  }
 0x157   :  { %v199_v43 = vmax.f32 %v198_v42, 0.0 }
 0x158   :  { %519 = vset.pattern.permute.xlu1 %v595_v22 }
 0x159   :  { %v200_v45 = vadd.f32 1e-05, %v199_v43  ;;  %420 = vperm.xlu1 %519, %v648_v21  }
 0x15b   :  { %528 = vrsqrt.f32 %v200_v45  ;;  %vm207_vm8 = vweird.f32 %v200_v45 }
 0x15e   :  { %520 = vset.pattern.permute.xlu2 %v595_v22 }
 0x15f   :  { %424 = vperm.xlu2 %520, %v654_v26  }
 0x161   :  { %v529_v47 = vpop.eup %528  ;;  %428 = vperm.xlu1 %519, %v659_v27  }
 0x162   :  { %v202_v48 = vmul.f32 %v529_v47, %v200_v45  ;;  %vm208_vm7 = vweird.f32 %v529_v47 }
 0x163   :  { %vm209_vm9 = vmor %vm207_vm8, %vm208_vm7 }
 0x164   :  { %v203_v51 = vmul.f32 %v529_v47, %v202_v48 }
 0x166   :  { %v204_v52 = vmul.f32 0.5, %v203_v51 }
 0x167   :  { %432 = vperm.xlu2 %520, %v669_v30  }
 0x168   :  { %v205_v53 = vsub.f32 1.5, %v204_v52 }
 0x16a   :  { %v206_v56 = vmul.f32 %v529_v47, %v205_v53 }
 0x16c   :  { %v210_v62 = vsel %vm209_vm9, %v529_v47, %v206_v56 }
 0x16d   :  { %v217_v3 = vmul.f32 %v213_v59, %v210_v62  ;;  %v216_v4 = vmul.f32 %v212_v60, %v210_v62  ;;  %v218_v6 = vmul.f32 %v214_v61, %v210_v62  ;;  %v215_v57 = vmul.f32 %v211_v5, %v210_v62 }
 0x16f   :  { %v237_v55 = vmul.f32 %v229_v44, %v217_v3  ;;  %v238_v7 = vmul.f32 %v233_v0, %v218_v6  ;;  %v236_v8 = vmul.f32 %v225_v49, %v216_v4  ;;  %v235_v11 = vmul.f32 %v221_v63, %v215_v57 }
 0x171   :  { %v258_v9 = vadd.f32 %v253_v46, %v238_v7  ;;  %v257_v10 = vadd.f32 %v249_v58, %v237_v55  ;;  %v256_v14 = vadd.f32 %v245_v12, %v236_v8  ;;  %v255_v54 = vadd.f32 %v241_v13, %v235_v11 }
 0x173   :  { %304 = vmatpush.msra.mxu1 %v258_v9  ;;  %489 = vmatpush.msra.mxu2 %v258_v9 }
 0x175   :  { %305 = vmatpush.msra.mxu1 %v257_v10  ;;  %490 = vmatpush.msra.mxu2 %v257_v10 }
 0x177   :  { %306 = vmatpush.msra.mxu1 %v256_v14  ;;  %491 = vmatpush.msra.mxu2 %v256_v14 }
 0x179   :  { %307 = vmatpush.msra.mxu1 %v255_v54  ;;  %492 = vmatpush.msra.mxu2 %v255_v54 }
 0x17a   :  { %484 = vmatmul.msk.f32.vlgmr.msra.gmra.mxu1 %vm279_vm10, %v259_v15  ;;  %486 = vmatmul.msk.f32.vlgmr.msra.gmra.mxu2 %vm279_vm10, %v261_v16 }
 0x182   :  { %485 = vmatmul.msk.f32.gmra.mxu1 %vm279_vm10, %v260_v18  ;;  %487 = vmatmul.msk.f32.gmra.mxu2 %vm279_vm10, %v262_v20 }
 0x18e   :  { %v265_v19 = vpop.permute.xlu2 %264 }
 0x196   :  { %v273_v25 = vpop.permute.xlu2 %272 }
 0x19f   :  { %v385_v3 = vpop.permute.xlu2 %384 }
 0x1a4   :  { %v269_v29 = vpop.permute.xlu1 %268  ;;  %v277_v26 = vpop.permute.xlu0 %276 }
 0x1a8   :  { %v401_v12 = vpop.permute.xlu2 %400 }
 0x1ad   :  { %v405_v22 = vpop.permute.xlu0 %404 }
 0x1b0   :  { %v409_v15 = vpop.permute.xlu2 %408 }
 0x1b2   :  { %v381_v2 = vpop.permute.xlu1 %380 }
 0x1ba   :  { %v389_v11 = vpop.permute.xlu1 %388 }
 0x1c2   :  { %v393_v54 = vpop.permute.xlu1 %392 }
 0x1f7   :  { %v309_v23 = vpop.f32.mrf.mxu1 }
 0x1f8   :  { %v310_v24 = vadd.f32 %v309_v23, %v265_v19  ;;  %v421_v23 = vpop.permute.xlu1 %420 }
 0x1fa   :  { %v755_v31 = vmax.f32 %v310_v24, 0.0 }
 0x1fc   :  { %v339_v34 = vmul.f32 %v755_v31, %v755_v31  ;;  %v325_v30 = vsel %vm157_vm5, %v755_v31, 0.0 }
 0x1fd   :  { %v315_v28 = vpop.f32.mrf.mxu2 }
 0x1fe   :  { %v316_v32 = vadd.f32 %v315_v28, %v273_v25  ;;  %v343_v41 = vsel %vm157_vm5, %v339_v34, 0.0 }
 0x1ff   :  { %v312_v33 = vpop.f32.mrf.mxu1 }
 0x200   :  { %v313_v21 = vadd.f32 %v312_v33, %v269_v29  ;;  %v759_v27 = vmax.f32 %v316_v32, 0.0 }
 0x202   :  { %v761_v36 = vmax.f32 %v313_v21, 0.0  ;;  %v341_v42 = vmul.f32 %v759_v27, %v759_v27  ;;  %v328_v46 = vsel %vm157_vm5, %v759_v27, 0.0 }
 0x204   :  { %v326_v37 = vsel %vm157_vm5, %v761_v36, 0.0  ;;  %v340_v38 = vmul.f32 %v761_v36, %v761_v36  ;;  %v346_v49 = vsel %vm157_vm5, %v341_v42, 0.0 }
 0x205   :  { %v327_v39 = vadd.f32 %v326_v37, %v325_v30  ;;  %v318_v40 = vpop.f32.mrf.mxu2 }
 0x206   :  { %v344_v43 = vsel %vm157_vm5, %v340_v38, 0.0  ;;  %v319_v44 = vadd.f32 %v318_v40, %v277_v26 }
 0x207   :  { %v345_v45 = vadd.f32 %v344_v43, %v343_v41  ;;  %v329_v48 = vadd.f32 %v328_v46, %v327_v39  ;;  %v413_v41 = vpop.permute.xlu0 %412 }
 0x208   :  { %v324_v47 = vmax.f32 %v319_v44, 0.0 }
 0x209   :  { %v347_v52 = vadd.f32 %v346_v49, %v345_v45 }
 0x20a   :  { %v330_v50 = vsel %vm157_vm5, %v324_v47, 0.0  ;;  %v342_v51 = vmul.f32 %v324_v47, %v324_v47 }
 0x20b   :  { %v331_v53 = vadd.f32 %v330_v50, %v329_v48 }
 0x20c   :  { %v348_v56 = vsel %vm157_vm5, %v342_v51, 0.0 }
 0x20d   :  { %v332_v58 = vrot.slane %v331_v53, 4  ;;  %v349_v59 = vadd.f32 %v348_v56, %v347_v52 }
 0x20f   :  { %v333_v60 = vadd.f32 %v332_v58, %v331_v53  ;;  %v350_v61 = vrot.slane %v349_v59, 4 }
 0x211   :  { %v334_v62 = vrot.slane %v333_v60, 2  ;;  %v351_v63 = vadd.f32 %v350_v61, %v349_v59 }
 0x213   :  { %v335_v0 = vadd.f32 %v334_v62, %v333_v60  ;;  %v352_v1 = vrot.slane %v351_v63, 2  ;;  %v456_v62 = vpop.permute.xlu0 %455 }
 0x215   :  { %v336_v4 = vrot.slane %v335_v0, 1  ;;  %v353_v5 = vadd.f32 %v352_v1, %v351_v63  ;;  %v458_v1 = vperm.slane %v456_v62, 0 }
 0x217   :  { %v337_v6 = vadd.f32 %v336_v4, %v335_v0  ;;  %v354_v55 = vrot.slane %v353_v5, 1 }
 0x219   :  { %v338_v57 = vmul.f32 %v337_v6, %v726_v35  ;;  %v355_v7 = vadd.f32 %v354_v55, %v353_v5 }
 0x21b   :  { %v356_v8 = vmul.f32 %v355_v7, %v726_v35  ;;  %v357_v9 = vmul.f32 %v338_v57, %v338_v57  ;;  %v425_v35 = vpop.permute.xlu2 %424  ;;  %v371_v25 = vsub.f32 %v755_v31, %v338_v57  ;;  %v373_v28 = vsub.f32 %v759_v27, %v338_v57  ;;  %v429_v31 = vpop.permute.xlu1 %428 }
 0x21c   :  { %v372_v29 = vsub.f32 %v761_v36, %v338_v57  ;;  %v374_v32 = vsub.f32 %v324_v47, %v338_v57 }
 0x21d   :  { %v358_v10 = vsub.f32 %v356_v8, %v357_v9 }
 0x21f   :  { %v359_v13 = vmax.f32 %v358_v10, 0.0 }
 0x221   :  { %v360_v14 = vadd.f32 1e-05, %v359_v13 }
 0x223   :  { %530 = vrsqrt.f32 %v360_v14  ;;  %vm367_vm12 = vweird.f32 %v360_v14  ;;  %v433_v36 = vpop.permute.xlu2 %432 }
 0x229   :  { %v531_v16 = vpop.eup %530 }
 0x22a   :  { %v362_v17 = vmul.f32 %v531_v16, %v360_v14  ;;  %vm368_vm11 = vweird.f32 %v531_v16 }
 0x22b   :  { %vm369_vm13 = vmor %vm367_vm12, %vm368_vm11 }
 0x22c   :  { %v363_v18 = vmul.f32 %v531_v16, %v362_v17 }
 0x22e   :  { %v364_v20 = vmul.f32 0.5, %v363_v18 }
 0x230   :  { %v365_v19 = vsub.f32 1.5, %v364_v20 }
 0x232   :  { %v366_v24 = vmul.f32 %v531_v16, %v365_v19 }
 0x234   :  { %v370_v33 = vsel %vm369_vm13, %v531_v16, %v366_v24 }
 0x235   :  { %v375_v21 = vmul.f32 %v371_v25, %v370_v33  ;;  %v377_v34 = vmul.f32 %v373_v28, %v370_v33  ;;  %v376_v26 = vmul.f32 %v372_v29, %v370_v33  ;;  %v378_v30 = vmul.f32 %v374_v32, %v370_v33 }
 0x237   :  { %v395_v37 = vmul.f32 %v381_v2, %v375_v21  ;;  %v397_v38 = vmul.f32 %v389_v11, %v377_v34  ;;  %v396_v39 = vmul.f32 %v385_v3, %v376_v26  ;;  %v398_v40 = vmul.f32 %v393_v54, %v378_v30 }
 0x239   :  { %v415_v42 = vadd.f32 %v401_v12, %v395_v37  ;;  %v417_v43 = vadd.f32 %v409_v15, %v397_v38  ;;  %v416_v44 = vadd.f32 %v405_v22, %v396_v39  ;;  %v418_v45 = vadd.f32 %v413_v41, %v398_v40 }
 0x23b   :  { %v435_v46 = vmul.f32 %v421_v23, %v415_v42  ;;  %v436_v27 = vmul.f32 %v425_v35, %v416_v44  ;;  %v437_v48 = vmul.f32 %v429_v31, %v417_v43  ;;  %v438_v50 = vmul.f32 %v433_v36, %v418_v45 }
 0x23d   :  { %v439_v47 = vsel %vm157_vm5, %v435_v46, 0.0  ;;  %v440_v49 = vsel %vm157_vm5, %v436_v27, 0.0  ;;  %v442_v52 = vsel %vm157_vm5, %v437_v48, 0.0  ;;  %v444_v56 = vsel %vm157_vm5, %v438_v50, 0.0 }
 0x23e   :  { %v441_v51 = vadd.f32 %v440_v49, %v439_v47 }
 0x240   :  { %v443_v53 = vadd.f32 %v442_v52, %v441_v51 }
 0x242   :  { %v445_v58 = vadd.f32 %v444_v56, %v443_v53 }
 0x244   :  { %v446_v59 = vrot.slane %v445_v58, 4 }
 0x246   :  { %v447_v60 = vadd.f32 %v446_v59, %v445_v58 }
 0x248   :  { %v448_v61 = vrot.slane %v447_v60, 2 }
 0x24a   :  { %v449_v63 = vadd.f32 %v448_v61, %v447_v60 }
 0x24c   :  { %v450_v0 = vrot.slane %v449_v63, 1 }
 0x24e   :  { %v451_v2 = vadd.f32 %v450_v0, %v449_v63 }
 0x250   :  { %v459_v3 = vadd.f32 %v458_v1, %v451_v2 }
 0x252   :  { %461 = vst.msk [vmem:[#allocation6] sm:$0x1] %vm460_vm14, %v459_v3 }
 0x253   :  { %472 = dma.vmem_to_hbm [thread:$0]  %s468_s21, 16, %s470_s24, [#allocation5]  }
 0x254   :  { %582 = dma.done.wait [#allocation5], 16  }
 0x255   :  { %583 = vsyncadd [#allocation5], 4294967280 }
 0x256   :  { %477 = vsyncpa [#allocation4], 1 }
 0x257   :  { %478 = vsyncpa [#allocation5], 1 }

</bundles_post_ra>
